<compile_context>
chip_gen: v7x
topology: tpu7x:2x2x1
jax: 0.10.0
libtpu: 0.0.40
codegen_flags: <defaults>
</compile_context>

<pallas_src>
import functools

import numpy as np

import jax
import jax.numpy as jnp
from jax.experimental import pallas as pl
from jax.experimental.pallas import tpu as pltpu


VMEM_LIMIT = 32 * 1024 * 1024     # explicit scoped-VMEM budget (safe on v5e/v6e/v7x)


# ----------------------------------------------------------------------------
# small helpers
# ----------------------------------------------------------------------------
def _round_up(x, m):
    return (x + m - 1) // m * m


def _lane_pad(c):
    """Pad channel counts below 128 up to a full lane width."""
    return 128 if c < 128 else c


def _pad_to(x, axis, size):
    pad = size - x.shape[axis]
    if pad <= 0:
        return x
    widths = [(0, 0)] * x.ndim
    widths[axis] = (0, pad)
    return jnp.pad(x, widths)


def _row_tiling(rows, cap=512):
    """Row-tile size (multiple of 8, <= cap) and padded row count."""
    bm = min(cap, _round_up(rows, 8))
    return bm, _round_up(rows, bm)


def _k_tiling(K, cap=2048):
    """K-tile size and zero-padded K so the grid divides evenly."""
    if K <= cap:
        return K, K
    return cap, _round_up(K, cap)


def _interp_matrix_np(out_size, in_size):
    """1-D bilinear (align_corners=True, PyTorch semantics) interpolation matrix."""
    if out_size > 1:
        src = np.arange(out_size, dtype=np.float64) * ((in_size - 1) / (out_size - 1))
    else:
        src = np.zeros((1,), np.float64)
    i0 = np.clip(np.floor(src).astype(np.int64), 0, in_size - 1)
    i1 = np.clip(i0 + 1, 0, in_size - 1)
    frac = (src - i0).astype(np.float32)
    A = np.zeros((out_size, in_size), np.float32)
    rows = np.arange(out_size)
    A[rows, i0] += (1.0 - frac)
    A[rows, i1] += frac
    return A


def _bilinear_matrix(ho, wo, hi, wi, rows_pad):
    """(rows_pad, hi*wi) bf16 matrix: out_flat = B @ x_flat (row-major spatial)."""
    B = np.kron(_interp_matrix_np(ho, hi), _interp_matrix_np(wo, wi))
    if rows_pad > B.shape[0]:
        B = np.pad(B, ((0, rows_pad - B.shape[0]), (0, 0)))
    return jnp.asarray(B, jnp.bfloat16)


# ----------------------------------------------------------------------------
# Kernel 1: conv (K-tiled matmul) + BN affine + ReLU
# ----------------------------------------------------------------------------
def _conv_kernel(lhs_ref, w_ref, sc_ref, sh_ref, out_ref, acc_ref, *, relu):
    k = pl.program_id(2)

    @pl.when(k == 0)
    def _():
        acc_ref[...] = jnp.zeros_like(acc_ref)

    acc_ref[...] += jnp.dot(lhs_ref[0], w_ref[...],
                            preferred_element_type=jnp.float32)

    @pl.when(k == pl.num_programs(2) - 1)
    def _():
        y = acc_ref[...] * sc_ref[...] + sh_ref[...]
        if relu:
            y = jnp.maximum(y, 0.0)
        out_ref[0] = y.astype(out_ref.dtype)


def conv_bn_act(x_nhwc, w_oihw, scale, shift, *, stride=1, relu=True,
                bm_cap=512, tk_cap=2048):
    """Conv2d (PyTorch OIHW, pad=(k-1)//2) + folded-BN affine (+ReLU), NHWC in/out.

    The activation may carry zero-padded channels; the weight's input-channel
    dim is zero-padded to match.  The output channel dim is padded to >=128
    lanes (extra channels are exactly zero) and kept padded for downstream use.
    Returns bf16 NHWC of shape (N, Ho, Wo, Cout_padded)."""
    N, H, W, Ca = x_nhwc.shape
    Cout, Cw, kh, kw = w_oihw.shape
    pad = (kh - 1) // 2
    Ho = (H + 2 * pad - kh) // stride + 1
    Wo = (W + 2 * pad - kw) // stride + 1
    HW = Ho * Wo

    if Cw < Ca:   # activation carries zero pad channels -> pad weight input dim
        w_oihw = jnp.pad(w_oihw, ((0, 0), (0, Ca - Cw), (0, 0), (0, 0)))
    Coutp = _lane_pad(Cout)

    # --- im2col operand (N, HW, K) with taps adjacent to Cin; 1x1 = direct ---
    if kh == 1 and kw == 1 and stride == 1:
        K = Ca
        lhs = x_nhwc.reshape(N, HW, K)
    else:
        xp = jnp.pad(x_nhwc, ((0, 0), (pad, pad), (pad, pad), (0, 0)))
        taps = [xp[:, dy:dy + stride * (Ho - 1) + 1:stride,
                    dx:dx + stride * (Wo - 1) + 1:stride, :]
                for dy in range(kh) for dx in range(kw)]
        K = kh * kw * Ca
        lhs = jnp.stack(taps, axis=3).reshape(N, HW, K)
    lhs = lhs.astype(jnp.bfloat16)

    wmat = jnp.transpose(w_oihw, (2, 3, 1, 0)).reshape(K, Cout)
    wmat = _pad_to(wmat, 1, Coutp).astype(jnp.bfloat16)
    sc = _pad_to(scale.reshape(1, Cout), 1, Coutp).astype(jnp.float32)
    sh = _pad_to(shift.reshape(1, Cout), 1, Coutp).astype(jnp.float32)

    # --- tiling: zero-pad rows and K so the grid divides evenly ---
    bm, HWp = _row_tiling(HW, bm_cap)
    tk, Kp = _k_tiling(K, tk_cap)
    if HWp > HW or Kp > K:
        lhs = jnp.pad(lhs, ((0, 0), (0, HWp - HW), (0, Kp - K)))
    if Kp > K:
        wmat = jnp.pad(wmat, ((0, Kp - K), (0, 0)))
    nm, nk = HWp // bm, Kp // tk

    out = pl.pallas_call(
        functools.partial(_conv_kernel, relu=relu),
        out_shape=jax.ShapeDtypeStruct((N, HWp, Coutp), jnp.bfloat16),
        grid=(N, nm, nk),
        in_specs=[
            pl.BlockSpec((1, bm, tk), lambda n, m, k: (n, m, k)),
            pl.BlockSpec((tk, Coutp), lambda n, m, k: (k, 0)),
            pl.BlockSpec((1, Coutp), lambda n, m, k: (0, 0)),
            pl.BlockSpec((1, Coutp), lambda n, m, k: (0, 0)),
        ],
        out_specs=pl.BlockSpec((1, bm, Coutp), lambda n, m, k: (n, m, 0)),
        scratch_shapes=[pltpu.VMEM((bm, Coutp), jnp.float32)],
        compiler_params=pltpu.CompilerParams(
            dimension_semantics=("parallel", "parallel", "arbitrary"),
            vmem_limit_bytes=VMEM_LIMIT),
    )(lhs, wmat, sc, sh)
    return out[:, :HW, :].reshape(N, Ho, Wo, Coutp)


# ----------------------------------------------------------------------------
# Kernel 2: bilinear resize (align_corners=True), streamed B, optional fused add
# ----------------------------------------------------------------------------
def _resize_kernel(b_ref, y_ref, out_ref):
    out_ref[0] = jnp.dot(b_ref[...], y_ref[0],
                         preferred_element_type=jnp.float32).astype(out_ref.dtype)


def _resize_add_kernel(b_ref, y_ref, a_ref, out_ref):
    r = jnp.dot(b_ref[...], y_ref[0], preferred_element_type=jnp.float32)
    out_ref[0] = (r + a_ref[0].astype(jnp.float32)).astype(out_ref.dtype)


def bilinear_resize(y_nhwc, out_hw, add=None, *, bm_cap=512):
    """out = resize(y, out_hw) [+ add].  `add` is NHWC at the target resolution.
    The interpolation matrix is streamed in (bm, HWsrc) row tiles; the coarse
    source tensor stays resident (it is the small one)."""
    N, Hi, Wi, C = y_nhwc.shape
    Ht, Wt = out_hw
    HWs, HWt = Hi * Wi, Ht * Wt
    bm, HWtp = _row_tiling(HWt, bm_cap)
    nm = HWtp // bm

    B = _bilinear_matrix(Ht, Wt, Hi, Wi, HWtp)                 # (HWtp, HWs) bf16
    yf = y_nhwc.reshape(N, HWs, C).astype(jnp.bfloat16)

    in_specs = [pl.BlockSpec((bm, HWs), lambda n, m: (m, 0)),
                pl.BlockSpec((1, HWs, C), lambda n, m: (n, 0, 0))]
    operands = [B, yf]
    if add is not None:
        af = add.reshape(N, HWt, C).astype(jnp.bfloat16)
        if HWtp > HWt:
            af = jnp.pad(af, ((0, 0), (0, HWtp - HWt), (0, 0)))
        in_specs.append(pl.BlockSpec((1, bm, C), lambda n, m: (n, m, 0)))
        operands.append(af)
        kernel = _resize_add_kernel
    else:
        kernel = _resize_kernel

    out = pl.pallas_call(
        kernel,
        out_shape=jax.ShapeDtypeStruct((N, HWtp, C), jnp.bfloat16),
        grid=(N, nm),
        in_specs=in_specs,
        out_specs=pl.BlockSpec((1, bm, C), lambda n, m: (n, m, 0)),
        compiler_params=pltpu.CompilerParams(
            dimension_semantics=("parallel", "parallel"),
            vmem_limit_bytes=VMEM_LIMIT),
    )(*operands)
    return out[:, :HWt, :].reshape(N, Ht, Wt, C)


# ----------------------------------------------------------------------------
# Kernel 3: fused tail = concat([p5,p4,p3,p2]) + project(1x1+BN+ReLU) + conv6(1x1+bias)
# ----------------------------------------------------------------------------
def _tail_kernel(p5_ref, p4_ref, p3_ref, p2_ref, wp_ref, sc_ref, sh_ref,
                 w6_ref, b6_ref, out_ref):
    acc = jnp.dot(p5_ref[0], wp_ref[0], preferred_element_type=jnp.float32)
    acc += jnp.dot(p4_ref[0], wp_ref[1], preferred_element_type=jnp.float32)
    acc += jnp.dot(p3_ref[0], wp_ref[2], preferred_element_type=jnp.float32)
    acc += jnp.dot(p2_ref[0], wp_ref[3], preferred_element_type=jnp.float32)
    y = jnp.maximum(acc * sc_ref[...] + sh_ref[...], 0.0)
    out = jnp.dot(y.astype(jnp.bfloat16), w6_ref[...],
                  preferred_element_type=jnp.float32) + b6_ref[...]
    out_ref[0] = out.astype(out_ref.dtype)


def project_classify(p5, p4, p3, p2, proj_w, proj_scale, proj_shift, w6, b6,
                     *, bm_cap=512):
    N, H, W, Cp = p5.shape          # Cp = lane-padded inter channels
    HW = H * W
    inter = proj_w.shape[0]
    nclass = w6.shape[0]
    nclass_p = _lane_pad(nclass)

    # project weight (inter, 4*inter, 1, 1) -> per-branch (Cp, Cp) matrices
    wp = jnp.transpose(proj_w.reshape(inter, 4, inter), (1, 2, 0))   # (branch, in, out)
    wp = _pad_to(_pad_to(wp, 1, Cp), 2, Cp).astype(jnp.bfloat16)
    sc = _pad_to(proj_scale.reshape(1, inter), 1, Cp).astype(jnp.float32)
    sh = _pad_to(proj_shift.reshape(1, inter), 1, Cp).astype(jnp.float32)
    w6m = jnp.transpose(w6.reshape(nclass, inter), (1, 0))           # (inter, nclass)
    w6m = _pad_to(_pad_to(w6m, 0, Cp), 1, nclass_p).astype(jnp.bfloat16)
    b6m = _pad_to(b6.reshape(1, nclass), 1, nclass_p).astype(jnp.float32)

    bm, HWp = _row_tiling(HW, bm_cap)
    nm = HWp // bm

    def prep(p):
        pf = p.reshape(N, HW, Cp).astype(jnp.bfloat16)
        if HWp > HW:
            pf = jnp.pad(pf, ((0, 0), (0, HWp - HW), (0, 0)))
        return pf

    pspec = pl.BlockSpec((1, bm, Cp), lambda n, m: (n, m, 0))
    out = pl.pallas_call(
        _tail_kernel,
        out_shape=jax.ShapeDtypeStruct((N, HWp, nclass_p), jnp.float32),
        grid=(N, nm),
        in_specs=[pspec, pspec, pspec, pspec,
                  pl.BlockSpec((4, Cp, Cp), lambda n, m: (0, 0, 0)),
                  pl.BlockSpec((1, Cp), lambda n, m: (0, 0)),
                  pl.BlockSpec((1, Cp), lambda n, m: (0, 0)),
                  pl.BlockSpec((Cp, nclass_p), lambda n, m: (0, 0)),
                  pl.BlockSpec((1, nclass_p), lambda n, m: (0, 0))],
        out_specs=pl.BlockSpec((1, bm, nclass_p), lambda n, m: (n, m, 0)),
        compiler_params=pltpu.CompilerParams(
            dimension_semantics=("parallel", "parallel"),
            vmem_limit_bytes=VMEM_LIMIT),
    )(prep(p5), prep(p4), prep(p3), prep(p2), wp, sc, sh, w6m, b6m)
    return out[:, :HW, :nclass].reshape(N, H, W, nclass)


# ----------------------------------------------------------------------------
# Deterministic parameter init (BatchNorm folded into scale/shift, eval mode)
# ----------------------------------------------------------------------------
def _bn_affine(key, c):
    k1, k2, k3, k4 = jax.random.split(key, 4)
    gamma = jax.random.uniform(k1, (c,), jnp.float32, 0.5, 1.5)
    beta = 0.1 * jax.random.normal(k2, (c,), jnp.float32)
    mean = 0.1 * jax.random.normal(k3, (c,), jnp.float32)
    var = jax.random.uniform(k4, (c,), jnp.float32, 0.5, 1.5)
    scale = gamma / jnp.sqrt(var + 1e-5)
    shift = beta - mean * scale
    return scale, shift


def _conv_w(key, cout, cin, k):
    fan_in = cin * k * k
    return jax.random.normal(key, (cout, cin, k, k), jnp.float32) / jnp.sqrt(float(fan_in))


def init_params(key, in_channels, out_channels, c2_ch, c3_ch):
    inter = in_channels // 4
    keys = iter(jax.random.split(key, 24))
    P = {}
    P['conv5_w'] = _conv_w(next(keys), inter, in_channels, 3)
    P['conv5_bn'] = _bn_affine(next(keys), inter)
    P['conv_down_w'] = _conv_w(next(keys), inter, in_channels, 3)
    P['conv_down_bn'] = _bn_affine(next(keys), inter)
    # localUp4 (connect on c3)
    P['lu4_w1'] = _conv_w(next(keys), c3_ch, c3_ch, 3)
    P['lu4_bn1'] = _bn_affine(next(keys), c3_ch)
    P['lu4_w2'] = _conv_w(next(keys), inter, c3_ch, 1)
    P['lu4_bn2'] = _bn_affine(next(keys), inter)
    # localUp3 (connect on c2)
    P['lu3_w1'] = _conv_w(next(keys), c2_ch, c2_ch, 3)
    P['lu3_bn1'] = _bn_affine(next(keys), c2_ch)
    P['lu3_w2'] = _conv_w(next(keys), inter, c2_ch, 1)
    P['lu3_bn2'] = _bn_affine(next(keys), inter)
    # refines
    P['ref2_w'] = _conv_w(next(keys), inter, inter, 3)
    P['ref2_bn'] = _bn_affine(next(keys), inter)
    P['ref3_w'] = _conv_w(next(keys), inter, inter, 3)
    P['ref3_bn'] = _bn_affine(next(keys), inter)
    # project
    P['proj_w'] = _conv_w(next(keys), inter, inter * 4, 1)
    P['proj_bn'] = _bn_affine(next(keys), inter)
    # conv6 (1x1, with bias)
    P['conv6_w'] = _conv_w(next(keys), out_channels, inter, 1)
    P['conv6_b'] = 0.1 * jax.random.normal(next(keys), (out_channels,), jnp.float32)
    return P


# ----------------------------------------------------------------------------
# Forward pass (mirrors fcn_fpn2Head.forward; c1/c20/c30/c40 are unused there)
# ----------------------------------------------------------------------------
def fcn_fpn2_head_forward(P, c1, c2, c3, c4, c20, c30, c40):
    to_nhwc = lambda t: jnp.transpose(t, (0, 2, 3, 1))
    c2n, c3n, c4n = to_nhwc(c2), to_nhwc(c3), to_nhwc(c4)
    h, w = c2.shape[2], c2.shape[3]
    h3, w3 = c3.shape[2], c3.shape[3]

    # p5 = interp(conv_down(c4), (h, w))
    p5 = bilinear_resize(
        conv_bn_act(c4n, P['conv_down_w'], *P['conv_down_bn'], stride=2), (h, w))
    # p4 = interp(conv5(c4), (h, w))
    p4 = bilinear_resize(
        conv_bn_act(c4n, P['conv5_w'], *P['conv5_bn']), (h, w))

    # out3 = localUp4(c3, p4) = connect(c3) + interp(p4, c3.hw)
    t = conv_bn_act(c3n, P['lu4_w1'], *P['lu4_bn1'])
    t = conv_bn_act(t, P['lu4_w2'], *P['lu4_bn2'])
    out3 = bilinear_resize(p4, (h3, w3), add=t)

    # out2 = localUp3(c2, out3)
    t = conv_bn_act(c2n, P['lu3_w1'], *P['lu3_bn1'])
    t = conv_bn_act(t, P['lu3_w2'], *P['lu3_bn2'])
    out2 = bilinear_resize(out3, (h, w), add=t)

    # p3 = interp(refine3(out3), (h, w)) ;  p2 = refine2(out2)
    p3 = bilinear_resize(
        conv_bn_act(out3, P['ref3_w'], *P['ref3_bn']), (h, w))
    p2 = conv_bn_act(out2, P['ref2_w'], *P['ref2_bn'])

    # conv6(project(cat([p5,p4,p3,p2], C)))  -- fused tail kernel (eval-mode Dropout2d = id)
    out = project_classify(p5, p4, p3, p2, P['proj_w'], *P['proj_bn'],
                           P['conv6_w'], P['conv6_b'])
    return jnp.transpose(out, (0, 3, 1, 2))   # NHWC -> NCHW


if __name__ == "__main__":
    key = jax.random.PRNGKey(0)
    N = 2
    in_channels = 32          # c4 channels; inter_channels = 8
    out_channels = 6
    c2_ch, c3_ch = 16, 24

    kp, k1, k2, k3, k4 = jax.random.split(key, 5)
    P = init_params(kp, in_channels, out_channels, c2_ch, c3_ch)

    # NCHW inputs (scaled-down FPN pyramid: strides 4/8/16/32)
    c1 = jax.random.normal(k1, (N, 8, 32, 32), jnp.float32)        # unused by head
    c2 = jax.random.normal(k2, (N, c2_ch, 16, 16), jnp.float32)
    c3 = jax.random.normal(k3, (N, c3_ch, 8, 8), jnp.float32)
    c4 = jax.random.normal(k4, (N, in_channels, 4, 4), jnp.float32)
    c20 = c30 = c40 = None                                         # unused

    y = fcn_fpn2_head_forward(P, c1, c2, c3, c4, c20, c30, c40)
    jax.block_until_ready(y)
    assert y.shape == (N, out_channels, 16, 16), y.shape
    print("KERNEL_OK")
</pallas_src>

<mosaic_0001>
module attributes {stable_mosaic.version = 11 : i64} {
  func.func @_conv_kernel(%arg0: i32, %arg1: i32, %arg2: i32, %arg3: memref<1x8x288xbf16, #tpu.memory_space<vmem>>, %arg4: memref<288x128xbf16, #tpu.memory_space<vmem>>, %arg5: memref<1x128xf32, #tpu.memory_space<vmem>>, %arg6: memref<1x128xf32, #tpu.memory_space<vmem>>, %arg7: memref<1x8x128xbf16, #tpu.memory_space<vmem>>, %arg8: memref<8x128xf32, #tpu.memory_space<vmem>>) attributes {dimension_semantics = [#tpu.dimension_semantics<parallel>, #tpu.dimension_semantics<parallel>, #tpu.dimension_semantics<arbitrary>], iteration_bounds = array<i64: 2, 1, 1>, scalar_prefetch = 0 : i64, scratch_operands = 1 : i64, tpu.core_type = #tpu.core_type<tc>, window_params = [{transform_indices = @transform_0, window_bounds = array<i64: 1, 8, 288>}, {transform_indices = @transform_1, window_bounds = array<i64: 288, 128>}, {pipeline_mode = #tpu.pipeline_mode<synchronous>, transform_indices = @transform_2, window_bounds = array<i64: 1, 128>}, {pipeline_mode = #tpu.pipeline_mode<synchronous>, transform_indices = @transform_3, window_bounds = array<i64: 1, 128>}, {transform_indices = @transform_4, window_bounds = array<i64: 1, 8, 128>}]} {
    %c0_i32 = arith.constant 0 : i32
    %0 = arith.cmpi eq, %arg2, %c0_i32 : i32
    %1 = arith.extui %0 : i1 to i32
    %c0_i32_0 = arith.constant 0 : i32
    %2 = arith.cmpi ne, %1, %c0_i32_0 : i32
    scf.if %2 {
      %cst_11 = arith.constant 0.000000e+00 : f32
      %13 = vector.broadcast %cst_11 : f32 to vector<8x128xf32>
      %c0_12 = arith.constant 0 : index
      %c0_13 = arith.constant 0 : index
      %14 = vector.load %arg8[%c0_12, %c0_13] : memref<8x128xf32, #tpu.memory_space<vmem>>, vector<8x128xf32>
      tpu.vector_store %arg8[%c0_12, %c0_13], %13 {strides = array<i32>} : memref<8x128xf32, #tpu.memory_space<vmem>>, vector<8x128xf32>,
    } else {
    }
    %c0 = arith.constant 0 : index
    %c0_1 = arith.constant 0 : index
    %3 = vector.load %arg8[%c0, %c0_1] : memref<8x128xf32, #tpu.memory_space<vmem>>, vector<8x128xf32>
    %c0_2 = arith.constant 0 : index
    %c0_3 = arith.constant 0 : index
    %c0_4 = arith.constant 0 : index
    %4 = vector.load %arg3[%c0_2, %c0_3, %c0_4] : memref<1x8x288xbf16, #tpu.memory_space<vmem>>, vector<1x8x288xbf16>
    %5 = vector.shape_cast %4 : vector<1x8x288xbf16> to vector<8x288xbf16>
    %c0_5 = arith.constant 0 : index
    %c0_6 = arith.constant 0 : index
    %6 = vector.load %arg4[%c0_5, %c0_6] : memref<288x128xbf16, #tpu.memory_space<vmem>>, vector<288x128xbf16>
    %cst = arith.constant dense<0.000000e+00> : vector<8x128xf32>
    %7 = tpu.matmul %5, %6, %cst {dimension_numbers = #tpu.dot_dimension_numbers<[1], [0], [0], [1], [0, 0, 1, 1], [], []>} : vector<8x288xbf16>, vector<288x128xbf16>, vector<8x128xf32> -> vector<8x128xf32>
    %8 = arith.addf %3, %7 : vector<8x128xf32>
    %c0_7 = arith.constant 0 : index
    %c0_8 = arith.constant 0 : index
    %9 = vector.load %arg8[%c0_7, %c0_8] : memref<8x128xf32, #tpu.memory_space<vmem>>, vector<8x128xf32>
    tpu.vector_store %arg8[%c0_7, %c0_8], %8 {strides = array<i32>} : memref<8x128xf32, #tpu.memory_space<vmem>>, vector<8x128xf32>,
    %c0_i32_9 = arith.constant 0 : i32
    %10 = arith.cmpi eq, %arg2, %c0_i32_9 : i32
    %11 = arith.extui %10 : i1 to i32
    %c0_i32_10 = arith.constant 0 : i32
    %12 = arith.cmpi ne, %11, %c0_i32_10 : i32
    scf.if %12 {
      %c0_11 = arith.constant 0 : index
      %c0_12 = arith.constant 0 : index
      %13 = vector.load %arg8[%c0_11, %c0_12] : memref<8x128xf32, #tpu.memory_space<vmem>>, vector<8x128xf32>
      %c0_13 = arith.constant 0 : index
      %c0_14 = arith.constant 0 : index
      %14 = vector.load %arg5[%c0_13, %c0_14] : memref<1x128xf32, #tpu.memory_space<vmem>>, vector<1x128xf32>
      %15 = vector.broadcast %14 : vector<1x128xf32> to vector<8x128xf32>
      %16 = arith.mulf %13, %15 : vector<8x128xf32>
      %c0_15 = arith.constant 0 : index
      %c0_16 = arith.constant 0 : index
      %17 = vector.load %arg6[%c0_15, %c0_16] : memref<1x128xf32, #tpu.memory_space<vmem>>, vector<1x128xf32>
      %18 = vector.broadcast %17 : vector<1x128xf32> to vector<8x128xf32>
      %19 = arith.addf %16, %18 : vector<8x128xf32>
      %cst_17 = arith.constant 0.000000e+00 : f32
      %20 = vector.broadcast %cst_17 : f32 to vector<8x128xf32>
      %21 = arith.maximumf %19, %20 : vector<8x128xf32>
      %22 = arith.truncf %21 : vector<8x128xf32> to vector<8x128xbf16>
      %c0_18 = arith.constant 0 : index
      %c0_19 = arith.constant 0 : index
      %c0_20 = arith.constant 0 : index
      %23 = vector.load %arg7[%c0_18, %c0_19, %c0_20] : memref<1x8x128xbf16, #tpu.memory_space<vmem>>, vector<1x8x128xbf16>
      %24 = vector.shape_cast %23 : vector<1x8x128xbf16> to vector<8x128xbf16>
      %25 = vector.shape_cast %22 : vector<8x128xbf16> to vector<1x8x128xbf16>
      tpu.vector_store %arg7[%c0_18, %c0_19, %c0_20], %25 {strides = array<i32>} : memref<1x8x128xbf16, #tpu.memory_space<vmem>>, vector<1x8x128xbf16>,
    } else {
    }
    return
  }
  func.func @transform_0(%arg0: i32, %arg1: i32, %arg2: i32) -> (i32, i32, i32) {
    %c0_i32 = arith.constant 0 : i32
    return %arg0, %arg1, %arg2 : i32, i32, i32
  }
  func.func @transform_1(%arg0: i32, %arg1: i32, %arg2: i32) -> (i32, i32) {
    %c0_i32 = arith.constant 0 : i32
    %c0_i32_0 = arith.constant 0 : i32
    return %arg2, %c0_i32 : i32, i32
  }
  func.func @transform_2(%arg0: i32, %arg1: i32, %arg2: i32) -> (i32, i32) {
    %c0_i32 = arith.constant 0 : i32
    %c0_i32_0 = arith.constant 0 : i32
    %c0_i32_1 = arith.constant 0 : i32
    return %c0_i32, %c0_i32_0 : i32, i32
  }
  func.func @transform_3(%arg0: i32, %arg1: i32, %arg2: i32) -> (i32, i32) {
    %c0_i32 = arith.constant 0 : i32
    %c0_i32_0 = arith.constant 0 : i32
    %c0_i32_1 = arith.constant 0 : i32
    return %c0_i32, %c0_i32_0 : i32, i32
  }
  func.func @transform_4(%arg0: i32, %arg1: i32, %arg2: i32) -> (i32, i32, i32) {
    %c0_i32 = arith.constant 0 : i32
    %c0_i32_0 = arith.constant 0 : i32
    return %arg0, %arg1, %c0_i32 : i32, i32, i32
  }
}

</mosaic_0001>

<bundles_post_ra>
// kernel: tpu_custom_call.1
= control target key start
LH: loop header
LB: loop body
LE: loop exit
PB: predicated region body
PF: predicated region fallthrough
CT: control target
= control target key end

     0   :  { %9 = vsyncpa [#allocation4], 0  ;;  %s1222_s0 = inlined_call_operand.hbm [shape: bf16[2,8,288], index: 0, kind: input, shape index: {}]   ;;  %s1223_s1 = inlined_call_operand.hbm [shape: bf16[288,128], index: 1, kind: input, shape index: {}]   ;;  %s1224_s2 = inlined_call_operand.vmem [shape: f32[1,128], index: 2, kind: input, shape index: {}]   ;;  %s1225_s3 = inlined_call_operand.vmem [shape: f32[1,128], index: 3, kind: input, shape index: {}]   ;;  %s1226_s4 = inlined_call_operand.hbm [shape: bf16[2,8,128], index: 4, kind: output, shape index: {}]  }
   0x1   :  { %11 = vsyncpa [#allocation4 + $0x1], 0 }
   0x2   :  { %12 = vsyncpa [#allocation7], 0 }
   0x3   :  { %13 = vsyncpa [#allocation5], 0 }
   0x4   :  { %15 = vsyncpa [#allocation5 + $0x1], 0  ;;  %s1003_s15 = smov 0   ;;  %s1005_s16 = smov 0  }
   0x5   :  { %s1007_s17 = smov 0   ;;  %s1009_s18 = smov 0  }
   0x6   :  { %s1011_s19 = smov 0   ;;  %s1013_s20 = smov 0  }
   0x7 LB: > { %s654_s21 = sadd.s32 4294967295, %s969_s20   ;;  %s655_s22 = sadd.s32 4294967294, %s969_s20   ;;  %s969_s20 = sphi %s1013_s20, %s21_s20   ;;  %s965_s19 = sphi %s1011_s19, %s1249_s19   ;;  %s961_s18 = sphi %s1009_s18, %s1248_s18   ;;  %s957_s17 = sphi %s1007_s17, %s1247_s17   ;;  %s953_s16 = sphi %s1005_s16, %s1246_s16   ;;  %s949_s15 = sphi %s1003_s15, %s1245_s15  }
   0x8   : > { %p64_p0 = scmp.ne.s32.totalorder %s953_s16, %s949_s15  ;;  %p1037_p1 = scmp.eq.s32.totalorder %s654_s21, 0 }
   0x9   : > { %p1041_p2 = scmp.eq.s32.totalorder %s654_s21, 1  ;;  %p164_p3 = scmp.eq.s32.totalorder %s655_s22, 1 }
   0xa   : > { %s1231_s23 = scalar_select %p1037_p1, 1, 0 }
   0xb   : > { %s1232_s24 = scalar_select %p1041_p2, 1, 0 }
   0xc   : > { %p1047_p4 = por %p1037_p1, %p64_p0  ;;  %p656_p5 = scmp.ge.s32.totalorder %s969_s20, 1 }
   0xd   : > { %p1052_p6 = por %p164_p3, %p64_p0  ;;  %p171_p7 = scmp.lt.s32.totalorder %s969_s20, 3 }
   0xe   : > { %s1233_s25 = scalar_select %p1047_p4, 1, 0 }
   0xf   : > { %s1234_s26 = scalar_select %p1052_p6, 1, 0 }
  0x10   : > { %p1057_p8 = pnand %p656_p5, %p171_p7  ;;  %s971_s28 = smov [#allocation6]  }
  0x11   : > { %s186_s29 = sshll.u32 %s971_s28, 4  ;;  %s40_s5 = sadd.s32 1, %s965_s19  ;;  %s187_s29 = int_to_ptr.vmem [resolvable:$true] %s186_s29 }
  0x12   : > { %s1235_s27 = scalar_select %p1057_p8, 1, 0 }
  0x13   : > { %p735_p9 = pneg %p1057_p8  ;;  %s825_s8 = scalar_lea.hbm %s1223_s1, 2304 }
  0x14   : > { %p826_p12 = scmp.ne.s32.totalorder %s1223_s1, %s825_s8  ;;  %p832_p5 = scmp.lt.u32.totalorder %s825_s8, %s1223_s1 }
  0x15   : > { %p1066_p11 = pnand %p735_p9, %p1037_p1 }
  0x17   : > { %p827_p13 = pneg %p1066_p11 }
  0x19   : > { %p828_p0 = pnand %p827_p13, %p826_p12 }
  0x1b   : > { %p829_p3 = pneg %p828_p0 }
  0x1d   : > { %p834_p7 = pnand %p832_p5, %p829_p3 }
  0x1f   : > { %837 = shalt.err (!%p834_p7)
}
  0x20   : > { %s838_s13 = scalar_lea.vmem %s187_s29, 2304  ;;  %p846_p1 = scmp.lt.s32.totalorder %s187_s29, %s187_s29 }
  0x21   : > { %p839_p9 = scmp.ne.s32.totalorder %s187_s29, %s838_s13  ;;  %p847_p4 = scmp.lt.s32.totalorder %s838_s13, %s838_s13 }
  0x23   : > { %p841_p10 = pnand %p839_p9, %p827_p13  ;;  %p848_p8 = por %p847_p4, %p846_p1 }
  0x25   : > { %p842_p6 = pneg %p841_p10 }
  0x27   : > { %p849_p2 = pnand %p848_p8, %p842_p6 }
  0x29   : > { %852 = shalt.err (!%p849_p2)
}
  0x2a   : > { %s972_s14 = smov 64   ;;  %s973_s21 = smov 4  }
  0x2b   : > { %738 = dma.hbm_to_vmem [thread:$0]  (!%p1066_p11), %s1223_s1, 2304, %s187_s29, [#allocation7], %s972_s14, %s972_s14, %s973_s21  }
  0x2c   : > { %p42_p1 = scmp.ge.s32.totalorder %s40_s5, 2  ;;  %s51_s6 = sadd.s32 1, %s957_s17 }
  0x2d   : > { %p58_p2 = scmp.ne.s32.totalorder %s957_s17, %s953_s16  ;;  %p59_p4 = scmp.eq.s32.totalorder %s969_s20, 0 }
  0x2e   : > { %s1251_s5 = smov (%p42_p1, %s40_s5), 0  ;;  %p1237_p8 = scmp.ne.s32.totalorder %s1232_s24, 0 }
  0x2f   : > { %p60_p6 = por %p59_p4, %p58_p2  ;;  %s44_s8 = ssub.s32 %s965_s19, %s1251_s5 }
  0x30   : > { %p1095_p10 = por %p1237_p8, %p58_p2  ;;  %p748_p12 = scmp.lt.s32.totalorder %s969_s20, 2 }
  0x31   : > { %p49_p13 = scmp.eq.s32.totalorder %s44_s8, 0  ;;  %s206_s30 = sand.u32 1, %s957_s17  }
  0x32   : > { %s724_s9 = smul.u32 12, %s206_s30  ;;  %p1107_p11 = pnand %p748_p12, %p60_p6 }
  0x33   : > { %s1104_s10 = scalar_select %p49_p13, %s957_s17, %s51_s6  }
  0x34   : > { %s725_s29 = smul.u32 192, %s965_s19  ;;  %s210_s11 = scalar_lea.vmem [#allocation3], %s724_s9 }
  0x35   : > { %s222_s12 = sshll.u32 %s210_s11, 4  ;;  %s207_s22 = scalar_lea.sflag [#allocation4], %s206_s30  ;;  %s1116_s12 = int_to_ptr.vmem [resolvable:$true] %s222_s12 }
  0x36   : > { %s1114_s21 = scalar_lea.hbm %s1222_s0, %s725_s29  ;;  %p855_p3 = pneg %p1107_p11 }
  0x37   : > { %s853_s28 = scalar_lea.hbm %s1114_s21, 192  ;;  %s858_s9 = scalar_lea.hbm %s1222_s0, 384 }
  0x38   : > { %p854_p0 = scmp.ne.s32.totalorder %s1114_s21, %s853_s28  ;;  %p859_p9 = scmp.lt.u32.totalorder %s1114_s21, %s1222_s0 }
  0x39   : > { %p860_p1 = scmp.lt.u32.totalorder %s858_s9, %s853_s28  ;;  %p862_p4 = scmp.lt.u32.totalorder %s853_s28, %s1114_s21 }
  0x3a   : > { %p856_p5 = pnand %p855_p3, %p854_p0 }
  0x3b   : > { %p861_p2 = por %p860_p1, %p859_p9 }
  0x3c   : > { %p857_p7 = pneg %p856_p5 }
  0x3d   : > { %p863_p6 = por %p862_p4, %p861_p2 }
  0x3f   : > { %p864_p8 = pnand %p863_p6, %p857_p7 }
  0x41   : > { %867 = shalt.err (!%p864_p8)
}
  0x42   : > { %s868_s30 = scalar_lea.vmem %s1116_s12, 192  ;;  %s974_s14 = smov [#allocation3]  }
  0x43   : > { %p869_p12 = scmp.ne.s32.totalorder %s1116_s12, %s868_s30  ;;  %s873_s24 = sshll.u32 %s974_s14, 4  ;;  %s874_s24 = int_to_ptr.vmem [resolvable:$false] %s873_s24 }
  0x44   : > { %s875_s6 = scalar_lea.vmem %s874_s24, 384  ;;  %p876_p5 = scmp.lt.s32.totalorder %s1116_s12, %s874_s24 }
  0x45   : > { %p871_p13 = pnand %p869_p12, %p855_p3  ;;  %p877_p9 = scmp.lt.s32.totalorder %s875_s6, %s868_s30 }
  0x47   : > { %p872_p0 = pneg %p871_p13  ;;  %p878_p1 = por %p877_p9, %p876_p5 }
  0x49   : > { %p879_p2 = pnand %p878_p1, %p872_p0 }
  0x4b   : > { %882 = shalt.err (!%p879_p2)
}
  0x4c   : > { %742 = dma.hbm_to_vmem [thread:$0]  (!%p1107_p11), %s1114_s21, 192, %s1116_s12, %s207_s22  }
  0x4d   : > { %p1240_p7 = scmp.ne.s32.totalorder %s1235_s27, 0 }
  0x4e   : > { %s1146_s28 = sand.u32 (!%p1240_p7), 1, %s953_s16   ;;  %p1241_p3 = scmp.ne.s32.totalorder (!%p1240_p7), %s1233_s25, 0 }
  0x4f   : > { %231 = sbr.rel (%p1240_p7) target bundleno = 363 (0x16b), region = 36  ;;  %s234_s9 = scalar_lea.sflag (!%p1240_p7), [#allocation4], %s1146_s28 }
  0x50   : > { %s726_s8 = smul.u32 (!%p1240_p7), 12, %s1146_s28 }
  0x52   : > { %s1150_s29 = scalar_lea.vmem (!%p1240_p7), [#allocation3], %s726_s8 }
  0x56   : > { %936 = dma.done.wait (%p1241_p3), %s234_s9, 192  }
  0x57   : > { %938 = vsyncadd (%p1241_p3), %s234_s9, 4294967104  ;;  %p1242_p11 = scmp.ne.s32.totalorder %s1231_s23, 0 }
  0x59   : > { %940 = dma.done.wait (%p1242_p11), [#allocation7], 2304  }
  0x5a   : > { %942 = vsyncadd (%p1242_p11), [#allocation7], 4294964992  ;;  %v975_v0 = vmov 0.0   ;;  %vm976_vm0 = vmmov 0   ;;  %v804_v1 = vld [vmem:[#allocation6 + $0x40] sm:$0xff]   ;;  %v806_v3 = vld [vmem:[#allocation6 + $0x48] sm:$0xff]  }
  0x5b   : > { %716 = vmatprep.subr.bf16.mxu1 %v975_v0  ;;  %720 = vmatprep.mubr.msk.bf16.mxu1 %vm976_vm0, %v975_v0  ;;  %v805_v2 = vld [vmem:[#allocation6] sm:$0xff]   ;;  %v807_v4 = vld [vmem:[#allocation6 + $0x8] sm:$0xff]   ;;  %v808_v5 = vld [vmem:[#allocation6 + $0x50] sm:$0xff]   ;;  %vm431_vm1 = vcmask 261120   ;;  %s662_s27 = sshll.u32 %s1146_s28, 2  ;;  %s688_s21 = sshll.u32 %s961_s18, 6 }
  0x5c   : > { %691 = vmatprep.subr.bf16.mxu0 %v804_v1  ;;  %v809_v6 = vld [vmem:[#allocation6 + $0x10] sm:$0xff]   ;;  %v810_v7 = vld [vmem:[#allocation6 + $0x58] sm:$0xff]   ;;  %v812_v9 = vld [vmem:[#allocation6 + $0x60] sm:$0xff]   ;;  %s265_s22 = scalar_lea.vmem [#allocation8], %s662_s27  ;;  %s1173_s24 = scalar_lea.hbm %s1226_s4, %s688_s21 }
  0x5d   : > { %692 = vmatpush3.bf16.msra.mxu0 %v805_v2  ;;  %v811_v8 = vld [vmem:[#allocation6 + $0x18] sm:$0xff]   ;;  %v818_v10 = vld [vmem:[#allocation6 + $0x80] sm:$0xff]   ;;  %v814_v12 = vld [vmem:[#allocation6 + $0x68] sm:$0xff]   ;;  %s555_s11 = sshll.u32 %s265_s22, 4  ;;  %s541_s6 = scalar_lea.sflag [#allocation5], %s1146_s28  ;;  %s1175_s11 = int_to_ptr.vmem [resolvable:$true] %s555_s11 }
  0x5e   : > { %693 = vmatprep.subr.bf16.mxu0 %v806_v3  ;;  %v813_v11 = vld [vmem:[#allocation6 + $0x20] sm:$0xff]   ;;  %717 = vmatpush3.bf16.msra.mxu1 %v818_v10  ;;  %v821_v13 = vld [vmem:[#allocation6 + $0x88] sm:$0xff]   ;;  %v824_v17 = vld [vmem:[%s1150_s29 + $0x8] ss:$0 sps:$4 sm:$0xff]   ;;  %s883_s8 = scalar_lea.vmem %s1175_s11, 64  ;;  %s977_s18 = smov [#allocation8]  }
  0x5f   : > { %718 = vmatprep.subr.bf16.mxu1 %v975_v0  ;;  %v275_v14 = vld [vmem:[%s1150_s29] sm:$0xff]  ;;  %p884_p4 = scmp.ne.s32.totalorder %s1175_s11, %s883_s8  ;;  %s887_s9 = sshll.u32 %s977_s18, 4  ;;  %s888_s9 = int_to_ptr.vmem [resolvable:$false] %s887_s9 }
  0x60   : > { %v815_v15 = vld [vmem:[#allocation6 + $0x28] sm:$0xff]   ;;  %v664_v16 = vcombine.high %v275_v14, %v275_v14  ;;  %v816_v18 = vld [vmem:[#allocation6 + $0x70] sm:$0xff]   ;;  %v819_v20 = vld [vmem:[#allocation6 + $0x78] sm:$0xff]   ;;  %v663_v22 = vcombine.low %v275_v14, %v275_v14  ;;  %s889_s29 = scalar_lea.vmem %s888_s9, 128  ;;  %p890_p12 = scmp.lt.s32.totalorder %s1175_s11, %s888_s9 }
  0x61   : > { %694 = vmatpush3.bf16.msra.mxu0 %v807_v4  ;;  %v817_v19 = vld [vmem:[#allocation6 + $0x30] sm:$0xff]   ;;  %v820_v21 = vld [vmem:[#allocation6 + $0x38] sm:$0xff]   ;;  %v685_v31 = vld [vmem:[%s1224_s2] ss:$0 sm:$0xff]  ;;  %p885_p6 = pnand %p884_p4, %p1095_p10  ;;  %p891_p13 = scmp.lt.s32.totalorder %s889_s29, %s883_s8 }
  0x62   : > { %695 = vmatprep.subr.bf16.mxu0 %v808_v5  ;;  %719 = vmatpush3.bf16.msra.mxu1 %v821_v13  ;;  %v686_v34 = vld [vmem:[%s1225_s3] ss:$0 sm:$0xff] }
  0x63   : > { %467 = vmatprep.mubr.bf16.mxu0 %v664_v16  ;;  %p886_p8 = pneg %p885_p6  ;;  %p892_p0 = por %p891_p13, %p890_p12 }
  0x65   : > { %696 = vmatpush3.bf16.msra.mxu0 %v809_v6  ;;  %721 = vmatmul.mubr.msk.bf16.vlgmr.msra.gmra.mrb[0].mxu1 %vm431_vm1, %v824_v17  ;;  %p893_p5 = pnand %p892_p0, %p886_p8 }
  0x66   : > { %697 = vmatprep.subr.bf16.mxu0 %v810_v7 }
  0x69   : > { %698 = vmatpush3.bf16.msra.mxu0 %v811_v8 }
  0x6a   : > { %699 = vmatprep.subr.bf16.mxu0 %v812_v9 }
  0x6d   : > { %700 = vmatpush3.bf16.msra.mxu0 %v813_v11 }
  0x6e   : > { %701 = vmatprep.subr.bf16.mxu0 %v814_v12 }
  0x71   : > { %702 = vmatpush3.bf16.msra.mxu0 %v815_v15 }
  0x72   : > { %703 = vmatprep.subr.bf16.mxu0 %v816_v18 }
  0x75   : > { %704 = vmatpush3.bf16.msra.mxu0 %v817_v19 }
  0x76   : > { %705 = vmatprep.subr.bf16.mxu0 %v819_v20 }
  0x79   : > { %706 = vmatpush3.bf16.msra.mxu0 %v820_v21 }
  0x7c   : > { %468 = vmatmul.mubr.bf16.vlgmr.msra.gmra.mrb[0].mxu0 %v663_v22 }
 0x138   : > { %v509_v23 = vpop.f32.mrb[0].mxu1 }
 0x139   : > { %v722_v24 = vpop.f32.mrb[1].mxu1 }
 0x13a   : > { %v512_v25 = vpop.f32.mrb[2].mxu1 }
 0x13b   : > { %v723_v26 = vpop.f32.mrb[3].mxu1 }
 0x14f   : > { %v707_v27 = vpop.f32.mrb[0].mxu0 }
 0x150   : > { %v708_v28 = vpop.f32.mrb[1].mxu0 }
 0x151   : > { %v709_v29 = vadd.f32 %v708_v28, %v707_v27  ;;  %v710_v30 = vpop.f32.mrb[2].mxu0 }
 0x152   : > { %v711_v32 = vpop.f32.mrb[3].mxu0 }
 0x153   : > { %v510_v33 = vadd.f32 %v709_v29, %v509_v23 }
 0x155   : > { %v528_v35 = vmul.f32 %v685_v31, %v510_v33 }
 0x157   : > { %v536_v36 = vadd.f32 %v686_v34, %v528_v35 }
 0x159   : > { %v537_v37 = vmax.f32 %v536_v36, 0.0 }
 0x15b   : > { %v538_v38 = vpack.c.bf16 %v537_v37, %v537_v37 }
 0x15d   : > { %539 = vst [vmem:[%s265_s22] sm:$0xf] %v538_v38 }
 0x15e   : > { %896 = shalt.err (!%p893_p5)
}
 0x15f   : > { %s897_s28 = scalar_lea.hbm %s1173_s24, 64  ;;  %s901_s27 = scalar_lea.hbm %s1226_s4, 128 }
 0x160   : > { %p898_p9 = scmp.ne.s32.totalorder %s1173_s24, %s897_s28  ;;  %p902_p7 = scmp.lt.u32.totalorder %s1173_s24, %s1226_s4 }
 0x161   : > { %p903_p3 = scmp.lt.u32.totalorder %s901_s27, %s897_s28  ;;  %p905_p4 = scmp.lt.u32.totalorder %s897_s28, %s1173_s24 }
 0x162   : > { %p899_p1 = pnand %p898_p9, %p1095_p10 }
 0x163   : > { %p904_p11 = por %p903_p3, %p902_p7 }
 0x164   : > { %p900_p2 = pneg %p899_p1 }
 0x165   : > { %p906_p6 = por %p905_p4, %p904_p11 }
 0x167   : > { %p907_p8 = pnand %p906_p6, %p900_p2 }
 0x169   : > { %910 = shalt.err (!%p907_p8)
}
 0x16a   : > { %733 = dma.vmem_to_hbm [thread:$0]  (%p1095_p10), %s1175_s11, 64, %s1173_s24, %s541_s6  }
 0x16b PF: > { %s567_s21 = sand.u32 1, %s949_s15   ;;  %p1243_p12 = scmp.ne.s32.totalorder %s1234_s26, 0 }
 0x16c   : > { %p1244_p13 = scmp.ge.s32.totalorder %s969_s20, 2  ;;  %s568_s22 = scalar_lea.sflag [#allocation5], %s567_s21 }
 0x16e   : > { %p744_p0 = pnand %p1244_p13, %p1243_p12 }
 0x170   : > { %944 = dma.done.wait (!%p744_p0), %s568_s22, 64  }
 0x171   : > { %946 = vsyncadd (!%p744_p0), %s568_s22, 4294967232  ;;  %s21_s20 = sadd.s32 1, %s969_s20   ;;  %s1245_s15 = smov %s953_s16 }
 0x172   : > { %p18_p5 = scmp.ge.s32.totalorder %s21_s20, 4   ;;  %s1246_s16 = smov %s957_s17 }
 0x173   : > { %s1247_s17 = smov %s1104_s10  ;;  %s1248_s18 = smov %s965_s19 }
 0x174   : > { %s1249_s19 = smov %s1251_s5  ;;  %20 = sbr.rel (!%p18_p5) target bundleno = 7 (0x7), region = 94 }
 0x17b   :  { %573 = vsyncpa [#allocation4], 1 }
 0x17c   :  { %575 = vsyncpa [#allocation4 + $0x1], 1 }
 0x17d   :  { %576 = vsyncpa [#allocation7], 1 }
 0x17e   :  { %577 = vsyncpa [#allocation5], 1 }
 0x17f   :  { %579 = vsyncpa [#allocation5 + $0x1], 1 }

</bundles_post_ra>
